<compile_context>
chip_gen: v5e
topology: v5e:2x2
jax: 0.10.0
libtpu: 0.0.40
codegen_flags: <defaults>
</compile_context>

<pallas_src>
import jax
import jax.numpy as jnp
from jax.experimental import pallas as pl
from jax.experimental.pallas import tpu as pltpu

LOG_STD_MIN = -5.0
LOG_STD_MAX = 2.0
HIDDEN_DIM = 32     # small stand-in for 1280 (unused by forward, parity only)
ACT_DIM = 18

LANE_WIDTH = 512          # lane-dense last dim (multiple of 128)
VMEM_LIMIT_BYTES = 32 << 20   # explicit scoped-VMEM limit (safe on v5e/v6e/v7x)


# ----------------------------------------------------------------------------
# Kernel body: tanh -> affine rescale -> exp (VPU/EUP, f32 internal compute)
# ----------------------------------------------------------------------------
def _actor_kernel(mu_ref, std_ref, mean_ref):
    mu = mu_ref[...].astype(jnp.float32)
    t = jnp.tanh(mu)
    log_std = LOG_STD_MIN + 0.5 * (LOG_STD_MAX - LOG_STD_MIN) * (t + 1.0)
    std_ref[...] = jnp.exp(log_std).astype(std_ref.dtype)
    mean_ref[...] = t.astype(mean_ref.dtype)   # SquashedNormal.mean = tanh(loc)


# ----------------------------------------------------------------------------
# Helpers
# ----------------------------------------------------------------------------
def _sublane_multiple(dtype):
    """Min sublane tile for the dtype: f32 -> 8, bf16/f16 -> 16, int8/fp8 -> 32."""
    itemsize = jnp.dtype(dtype).itemsize
    return 8 * max(1, 4 // max(1, itemsize))


def _device_kind():
    try:
        return jax.devices()[0].device_kind.lower()
    except Exception:
        return ""


def _tile_config():
    """(max block rows, has-two-tensorcores) for the current chip generation."""
    kind = _device_kind()
    if "v5" in kind:
        # v5e default scoped VMEM is 16 MiB; keep the footprint modest
        # (1024 x 512 x 4B x 3 arrays x 2 buffers = 12 MiB) and set the limit
        # explicitly below anyway.
        return 1024, False
    # v6e / v7x (and unknown-but-modern): 2048 x 512 f32 tiles -> 24 MiB
    # double-buffered footprint, within the 32 MiB scoped limit we request.
    return 2048, ("v7" in kind)


def _forward_reference(mu):
    """Plain-jnp forward (used as the small-input fallback and as the test ref)."""
    mu32 = mu.astype(jnp.float32)
    t = jnp.tanh(mu32)
    log_std = LOG_STD_MIN + 0.5 * (LOG_STD_MAX - LOG_STD_MIN) * (t + 1.0)
    return mu, jnp.exp(log_std).astype(mu.dtype), t.astype(mu.dtype)


# ----------------------------------------------------------------------------
# Public wrapper
# ----------------------------------------------------------------------------
def diag_gaussian_actor_forward(mu, *, max_block_rows=None):
    """Returns (loc, std, mean) of the SquashedNormal produced by forward(mu).

    `max_block_rows` optionally caps the per-step tile height (testing hook).
    """
    orig_shape = mu.shape
    dtype = mu.dtype
    n = mu.size                                   # static at trace time
    sub = _sublane_multiple(dtype)

    # -- small-input fallback: below one minimal (sub x LANE_WIDTH) tile the
    #    kernel-launch + pad/slice overhead dominates; let XLA fuse it.
    if n < sub * LANE_WIDTH:
        return _forward_reference(mu)

    block_cap, two_cores = _tile_config()
    if max_block_rows is not None:
        block_cap = max(sub, (max_block_rows // sub) * sub)

    # -- flatten to a lane-dense (rows_sub, LANE_WIDTH) slab; pad ONLY to the
    #    sublane multiple (never to a block multiple).
    rows = -(-n // LANE_WIDTH)                    # cdiv
    rows_sub = -(-rows // sub) * sub
    padded_n = rows_sub * LANE_WIDTH

    if rows_sub <= block_cap:
        if two_cores and rows_sub >= 2 * sub:
            # Ensure >= 2 grid steps so the "parallel" axis shards across
            # v7x's two TensorCores.
            block_rows = -(-(rows_sub // 2) // sub) * sub
        else:
            block_rows = rows_sub
    else:
        block_rows = block_cap

    flat = mu.reshape(-1)
    needs_pad = padded_n != n
    if needs_pad:
        flat = jnp.pad(flat, (0, padded_n - n))   # zero-pad: tanh/exp stay finite
    slab = flat.reshape(rows_sub, LANE_WIDTH)

    # -- streaming grid over the row axis; Pallas masks the ragged last block.
    grid = (pl.cdiv(rows_sub, block_rows),)
    spec = pl.BlockSpec((block_rows, LANE_WIDTH), lambda i: (i, 0))

    std_slab, mean_slab = pl.pallas_call(
        _actor_kernel,
        out_shape=(
            jax.ShapeDtypeStruct((rows_sub, LANE_WIDTH), dtype),
            jax.ShapeDtypeStruct((rows_sub, LANE_WIDTH), dtype),
        ),
        grid=grid,
        in_specs=[spec],
        out_specs=(spec, spec),
        compiler_params=pltpu.CompilerParams(
            dimension_semantics=("parallel",),
            vmem_limit_bytes=VMEM_LIMIT_BYTES,
        ),
    )(slab)

    if needs_pad:
        std = std_slab.reshape(-1)[:n].reshape(orig_shape)
        mean = mean_slab.reshape(-1)[:n].reshape(orig_shape)
    else:
        std = std_slab.reshape(orig_shape)
        mean = mean_slab.reshape(orig_shape)

    loc = mu   # forward passes the input straight through as the distribution loc
    return loc, std, mean


def init_unused_linear_params(key, hidden_dim=HIDDEN_DIM, act_dim=ACT_DIM):
    """Deterministic init of self.mu / self.log_std Linear(hidden_dim, act_dim).

    These parameters exist in DiagGaussianActor.__init__ (orthogonal weight,
    zero bias) but are never applied in forward(); created only for parity.
    """
    k1, k2 = jax.random.split(key)

    def orth(k):
        a = jax.random.normal(k, (hidden_dim, act_dim), dtype=jnp.float32)
        q, _ = jnp.linalg.qr(a)          # column-orthonormal
        return q.T                       # torch Linear weight layout: (act_dim, hidden_dim)

    return {
        "mu_w": orth(k1), "mu_b": jnp.zeros((act_dim,), jnp.float32),
        "log_std_w": orth(k2), "log_std_b": jnp.zeros((act_dim,), jnp.float32),
    }


if __name__ == "__main__":
    key = jax.random.PRNGKey(0)
    k_in, k_in2, k_in3, k_param = jax.random.split(key, 4)

    # TODO(synk): self.mu / self.log_std Linear layers are never applied in
    # forward(), so they are initialized here for parity but intentionally unused.
    _ = init_unused_linear_params(k_param)

    # 1) Tiny shape consistent with the module (batch, seq, act_dim) -> exercises
    #    the small-input fallback path.
    B, S, D = 2, 8, ACT_DIM
    mu = jax.random.normal(k_in, (B, S, D), dtype=jnp.float32)
    loc, std, mean = diag_gaussian_actor_forward(mu)
    jax.block_until_ready((loc, std, mean))
    r_loc, r_std, r_mean = _forward_reference(mu)
    assert jnp.allclose(loc, r_loc, atol=1e-6)
    assert jnp.allclose(std, r_std, atol=1e-5, rtol=1e-5)
    assert jnp.allclose(mean, r_mean, atol=1e-5, rtol=1e-5)

    # 2) bf16 input large enough for the Pallas path (ragged: needs sublane pad
    #    + output slice).
    mu2 = jax.random.normal(k_in2, (4, 256, ACT_DIM), dtype=jnp.bfloat16)
    loc2, std2, mean2 = diag_gaussian_actor_forward(mu2)
    jax.block_until_ready((loc2, std2, mean2))
    r_loc2, r_std2, r_mean2 = _forward_reference(mu2)
    assert jnp.allclose(loc2.astype(jnp.float32), r_loc2.astype(jnp.float32))
    assert jnp.allclose(std2.astype(jnp.float32), r_std2.astype(jnp.float32),
                        atol=2e-2, rtol=2e-2)
    assert jnp.allclose(mean2.astype(jnp.float32), r_mean2.astype(jnp.float32),
                        atol=2e-2, rtol=2e-2)

    # 3) Lane/sublane-aligned f32 input: zero pad / zero slice fast path, with a
    #    capped tile so the multi-step "parallel" grid + double buffering runs.
    mu3 = jax.random.normal(k_in3, (2, 64, 512), dtype=jnp.float32)
    loc3, std3, mean3 = diag_gaussian_actor_forward(mu3, max_block_rows=32)
    jax.block_until_ready((loc3, std3, mean3))
    r_loc3, r_std3, r_mean3 = _forward_reference(mu3)
    assert jnp.allclose(loc3, r_loc3, atol=1e-6)
    assert jnp.allclose(std3, r_std3, atol=1e-5, rtol=1e-5)
    assert jnp.allclose(mean3, r_mean3, atol=1e-5, rtol=1e-5)

    print("KERNEL_OK")
</pallas_src>

<mosaic_0001>
module attributes {stable_mosaic.version = 11 : i64} {
  func.func @_actor_kernel(%arg0: i32, %arg1: memref<48x512xbf16, #tpu.memory_space<vmem>>, %arg2: memref<48x512xbf16, #tpu.memory_space<vmem>>, %arg3: memref<48x512xbf16, #tpu.memory_space<vmem>>) attributes {dimension_semantics = [#tpu.dimension_semantics<parallel>], iteration_bounds = array<i64: 1>, scalar_prefetch = 0 : i64, scratch_operands = 0 : i64, tpu.core_type = #tpu.core_type<tc>, window_params = [{transform_indices = @transform_0, window_bounds = array<i64: 48, 512>}, {transform_indices = @transform_1, window_bounds = array<i64: 48, 512>}, {transform_indices = @transform_2, window_bounds = array<i64: 48, 512>}]} {
    %c0 = arith.constant 0 : index
    %c0_0 = arith.constant 0 : index
    %0 = vector.load %arg1[%c0, %c0_0] : memref<48x512xbf16, #tpu.memory_space<vmem>>, vector<48x512xbf16>
    %1 = arith.extf %0 : vector<48x512xbf16> to vector<48x512xf32>
    %2 = math.tanh %1 : vector<48x512xf32>
    %cst = arith.constant 1.000000e+00 : f32
    %3 = vector.broadcast %cst : f32 to vector<48x512xf32>
    %4 = arith.addf %2, %3 : vector<48x512xf32>
    %cst_1 = arith.constant 3.500000e+00 : f32
    %5 = vector.broadcast %cst_1 : f32 to vector<48x512xf32>
    %6 = arith.mulf %5, %4 : vector<48x512xf32>
    %cst_2 = arith.constant -5.000000e+00 : f32
    %7 = vector.broadcast %cst_2 : f32 to vector<48x512xf32>
    %8 = arith.addf %7, %6 : vector<48x512xf32>
    %9 = math.exp %8 : vector<48x512xf32>
    %10 = arith.truncf %9 : vector<48x512xf32> to vector<48x512xbf16>
    %c0_3 = arith.constant 0 : index
    %c0_4 = arith.constant 0 : index
    %11 = vector.load %arg2[%c0_3, %c0_4] : memref<48x512xbf16, #tpu.memory_space<vmem>>, vector<48x512xbf16>
    tpu.vector_store %arg2[%c0_3, %c0_4], %10 {strides = array<i32>} : memref<48x512xbf16, #tpu.memory_space<vmem>>, vector<48x512xbf16>,
    %12 = arith.truncf %2 : vector<48x512xf32> to vector<48x512xbf16>
    %c0_5 = arith.constant 0 : index
    %c0_6 = arith.constant 0 : index
    %13 = vector.load %arg3[%c0_5, %c0_6] : memref<48x512xbf16, #tpu.memory_space<vmem>>, vector<48x512xbf16>
    tpu.vector_store %arg3[%c0_5, %c0_6], %12 {strides = array<i32>} : memref<48x512xbf16, #tpu.memory_space<vmem>>, vector<48x512xbf16>,
    return
  }
  func.func @transform_0(%arg0: i32) -> (i32, i32) {
    %c0_i32 = arith.constant 0 : i32
    %c0_i32_0 = arith.constant 0 : i32
    return %arg0, %c0_i32 : i32, i32
  }
  func.func @transform_1(%arg0: i32) -> (i32, i32) {
    %c0_i32 = arith.constant 0 : i32
    %c0_i32_0 = arith.constant 0 : i32
    return %arg0, %c0_i32 : i32, i32
  }
  func.func @transform_2(%arg0: i32) -> (i32, i32) {
    %c0_i32 = arith.constant 0 : i32
    %c0_i32_0 = arith.constant 0 : i32
    return %arg0, %c0_i32 : i32, i32
  }
}

</mosaic_0001>

<bundles_post_ra>
// kernel: tpu_custom_call.1
= control target key start
LH: loop header
LB: loop body
LE: loop exit
PB: predicated region body
PF: predicated region fallthrough
CT: control target
= control target key end

     0   :  { %8 = vsyncpa [#allocation3], 0  ;;  %s588_s0 = inlined_call_operand.hbm [shape: bf16[48,512], index: 0, kind: input, shape index: {}]   ;;  %s589_s1 = inlined_call_operand.hbm [shape: bf16[48,512], index: 1, kind: output, shape index: {0}]   ;;  %s590_s2 = inlined_call_operand.hbm [shape: bf16[48,512], index: 2, kind: output, shape index: {1}]  }
   0x1   :  { %9 = vsyncpa [#allocation4], 0 }
   0x2   :  { %10 = vsyncpa [#allocation7], 0  ;;  %s15_s11 = sshll.u32 %s588_s0, 4  ;;  %s472_s12 = smov [#allocation2]   ;;  %s16_s11 = int_to_ptr.hbm [resolvable:$true] %s15_s11 }
   0x3   :  { %s17_s13 = sshll.u32 %s472_s12, 4  ;;  %s473_s14 = smov 256   ;;  %s18_s13 = int_to_ptr.vmem [resolvable:$true] %s17_s13 }
   0x4   :  { %s474_s15 = smov 16  }
   0x5   :  { %23 = dma.hbm_to_vmem [thread:$0]  %s16_s11, 1536, %s18_s13, [#allocation3], %s473_s14, %s473_s14, %s474_s15  }
   0x6   :  { %466 = dma.done.wait [#allocation3], 1536  }
   0x7   :  { %467 = vsyncadd [#allocation3], 4294965760  ;;  %v28_v0 = vld [vmem:[#allocation2] sm:$0xff]  ;;  %v29_v1 = vld [vmem:[#allocation2 + $0x8] sm:$0xff]  ;;  %s475_s0 = smov [#allocation6]   ;;  %s275_s19 = sshll.u32 %s590_s2, 4  ;;  %s276_s19 = int_to_ptr.hbm [resolvable:$true] %s275_s19 }
   0x8   :  { %v30_v2 = vld [vmem:[#allocation2 + $0x10] sm:$0xff]  ;;  %v40_v3 = vunpack.c.l.bf16 %v28_v0  ;;  %v41_v4 = vunpack.c.h.bf16 %v28_v0  ;;  %v42_v5 = vunpack.c.l.bf16 %v29_v1  ;;  %v43_v6 = vunpack.c.h.bf16 %v29_v1  ;;  %v31_v7 = vld [vmem:[#allocation2 + $0x18] sm:$0xff]  ;;  %v32_v10 = vld [vmem:[#allocation2 + $0x20] sm:$0xff]  ;;  %s572_s16 = sshll.u32 %s475_s0, 4  ;;  %s476_s2 = smov [#allocation5]   ;;  %s274_s16 = int_to_ptr.vmem [resolvable:$true] %s572_s16 }
   0x9   :  { %v44_v8 = vunpack.c.l.bf16 %v30_v2  ;;  %v45_v9 = vunpack.c.h.bf16 %v30_v2  ;;  %v46_v11 = vunpack.c.l.bf16 %v31_v7  ;;  %v47_v12 = vunpack.c.h.bf16 %v31_v7  ;;  %v33_v13 = vld [vmem:[#allocation2 + $0x28] sm:$0xff]  ;;  %v498_v16 = vld [vmem:[#allocation2 + $0x30] sm:$0xff]  ;;  %v505_v22 = vld [vmem:[#allocation2 + $0x38] sm:$0xff]  ;;  %s260_s20 = sshll.u32 %s476_s2, 4  ;;  %s262_s23 = sshll.u32 %s589_s1, 4  ;;  %s261_s20 = int_to_ptr.vmem [resolvable:$true] %s260_s20  ;;  %s263_s23 = int_to_ptr.hbm [resolvable:$true] %s262_s23 }
   0xa   :  { %298 = vtanh.f32 %v40_v3  ;;  %v48_v14 = vunpack.c.l.bf16 %v32_v10  ;;  %v49_v15 = vunpack.c.h.bf16 %v32_v10  ;;  %v50_v18 = vunpack.c.l.bf16 %v33_v13 }
   0xb   :  { %300 = vtanh.f32 %v41_v4  ;;  %v51_v21 = vunpack.c.h.bf16 %v33_v13  ;;  %v52_v25 = vunpack.c.l.bf16 %v498_v16  ;;  %v53_v29 = vunpack.c.h.bf16 %v498_v16 }
   0xc   :  { %302 = vtanh.f32 %v42_v5  ;;  %v54_v33 = vunpack.c.l.bf16 %v505_v22 }
   0xd   :  { %304 = vtanh.f32 %v43_v6 }
   0xe   :  { %306 = vtanh.f32 %v44_v8 }
   0xf   :  { %308 = vtanh.f32 %v45_v9 }
  0x10   :  { %v500_v17 = vpop.eup %298  ;;  %310 = vtanh.f32 %v46_v11 }
  0x11   :  { %v502_v19 = vpop.eup %300  ;;  %v88_v20 = vadd.f32 1.0, %v500_v17  ;;  %312 = vtanh.f32 %v47_v12 }
  0x12   :  { %v507_v23 = vpop.eup %302  ;;  %v89_v24 = vadd.f32 1.0, %v502_v19  ;;  %314 = vtanh.f32 %v48_v14 }
  0x13   :  { %v511_v26 = vpop.eup %304  ;;  %v112_v27 = vmul.f32 3.5, %v88_v20  ;;  %v90_v28 = vadd.f32 1.0, %v507_v23  ;;  %316 = vtanh.f32 %v49_v15 }
  0x14   :  { %v515_v30 = vpop.eup %306  ;;  %v113_v31 = vmul.f32 3.5, %v89_v24  ;;  %v91_v32 = vadd.f32 1.0, %v511_v26  ;;  %318 = vtanh.f32 %v50_v18 }
  0x15   :  { %v519_v34 = vpop.eup %308  ;;  %v136_v35 = vadd.f32 -5.0, %v112_v27  ;;  %v114_v36 = vmul.f32 3.5, %v90_v28  ;;  %v92_v37 = vadd.f32 1.0, %v515_v30  ;;  %320 = vtanh.f32 %v51_v21 }
  0x16   :  { %v522_v38 = vpop.eup %310  ;;  %v137_v39 = vadd.f32 -5.0, %v113_v31  ;;  %v115_v40 = vmul.f32 3.5, %v91_v32  ;;  %v93_v41 = vadd.f32 1.0, %v519_v34  ;;  %322 = vtanh.f32 %v52_v25 }
  0x17   :  { %v525_v42 = vpop.eup %312  ;;  %v160_v43 = vmul.f32 1.442695, %v136_v35  ;;  %v138_v44 = vadd.f32 -5.0, %v114_v36  ;;  %v116_v45 = vmul.f32 3.5, %v92_v37  ;;  %v94_v46 = vadd.f32 1.0, %v522_v38  ;;  %v36_v35 = vld [vmem:[#allocation2 + $0x40] sm:$0xff] }
  0x18   :  { %v528_v47 = vpop.eup %314  ;;  %v162_v48 = vmul.f32 1.442695, %v137_v39  ;;  %v139_v49 = vadd.f32 -5.0, %v115_v40  ;;  %v117_v50 = vmul.f32 3.5, %v93_v41  ;;  %v95_v51 = vadd.f32 1.0, %v525_v42 }
  0x19   :  { %v531_v52 = vpop.eup %316  ;;  %324 = vpow2.f32 %v160_v43  ;;  %v164_v53 = vmul.f32 1.442695, %v138_v44  ;;  %v140_v54 = vadd.f32 -5.0, %v116_v45  ;;  %v118_v55 = vmul.f32 3.5, %v94_v46 }
  0x1a   :  { %v533_v56 = vpop.eup %318  ;;  %326 = vpow2.f32 %v162_v48  ;;  %v166_v57 = vmul.f32 1.442695, %v139_v49  ;;  %v141_v58 = vadd.f32 -5.0, %v117_v50  ;;  %v119_v59 = vmul.f32 3.5, %v95_v51  ;;  %v38_v50 = vld [vmem:[#allocation2 + $0x50] sm:$0xff] }
  0x1b   :  { %v535_v60 = vpop.eup %320  ;;  %328 = vpow2.f32 %v164_v53  ;;  %v168_v61 = vmul.f32 1.442695, %v140_v54  ;;  %v142_v62 = vadd.f32 -5.0, %v118_v55  ;;  %v96_v63 = vadd.f32 1.0, %v528_v47 }
  0x1c   :  { %v538_v0 = vpop.eup %322  ;;  %330 = vpow2.f32 %v166_v57  ;;  %v170_v1 = vmul.f32 1.442695, %v141_v58  ;;  %v143_v2 = vadd.f32 -5.0, %v119_v59  ;;  %v97_v3 = vadd.f32 1.0, %v531_v52  ;;  %v39_v58 = vld [vmem:[#allocation2 + $0x58] sm:$0xff] }
  0x1d   :  { %332 = vpow2.f32 %v168_v61  ;;  %v172_v4 = vmul.f32 1.442695, %v142_v62  ;;  %v120_v5 = vmul.f32 3.5, %v96_v63  ;;  %v98_v6 = vadd.f32 1.0, %v533_v56 }
  0x1e   :  { %334 = vpow2.f32 %v170_v1  ;;  %v174_v7 = vmul.f32 1.442695, %v143_v2  ;;  %v121_v8 = vmul.f32 3.5, %v97_v3  ;;  %v99_v9 = vadd.f32 1.0, %v535_v60 }
  0x1f   :  { %v325_v10 = vpop.eup %324  ;;  %336 = vpow2.f32 %v172_v4  ;;  %v144_v11 = vadd.f32 -5.0, %v120_v5  ;;  %v122_v12 = vmul.f32 3.5, %v98_v6  ;;  %v100_v13 = vadd.f32 1.0, %v538_v0 }
  0x20   :  { %v327_v14 = vpop.eup %326  ;;  %338 = vpow2.f32 %v174_v7  ;;  %v145_v15 = vadd.f32 -5.0, %v121_v8  ;;  %v123_v18 = vmul.f32 3.5, %v99_v9  ;;  %v55_v40 = vunpack.c.h.bf16 %v505_v22 }
  0x21   :  { %v329_v20 = vpop.eup %328  ;;  %v208_v21 = vpack.c.bf16 %v327_v14, %v325_v10  ;;  %v176_v24 = vmul.f32 1.442695, %v144_v11  ;;  %v146_v25 = vadd.f32 -5.0, %v122_v12  ;;  %340 = vtanh.f32 %v53_v29  ;;  %v37_v29 = vld [vmem:[#allocation2 + $0x48] sm:$0xff] }
  0x22   :  { %v331_v27 = vpop.eup %330  ;;  %v178_v28 = vmul.f32 1.442695, %v145_v15  ;;  %v147_v31 = vadd.f32 -5.0, %v123_v18  ;;  %v124_v32 = vmul.f32 3.5, %v100_v13  ;;  %342 = vtanh.f32 %v54_v33 }
  0x23   :  { %v333_v36 = vpop.eup %332  ;;  %220 = vst [vmem:[#allocation5] sm:$0xff] %v208_v21  ;;  %v209_v37 = vpack.c.bf16 %v331_v27, %v329_v20  ;;  %344 = vpow2.f32 %v176_v24  ;;  %v180_v39 = vmul.f32 1.442695, %v146_v25  ;;  %v56_v46 = vunpack.c.l.bf16 %v36_v35 }
  0x24   :  { %v335_v41 = vpop.eup %334  ;;  %346 = vpow2.f32 %v178_v28  ;;  %v182_v43 = vmul.f32 1.442695, %v147_v31  ;;  %v148_v16 = vadd.f32 -5.0, %v124_v32  ;;  %v57_v49 = vunpack.c.h.bf16 %v36_v35 }
  0x25   :  { %v337_v44 = vpop.eup %336  ;;  %221 = vst [vmem:[#allocation5 + $0x8] sm:$0xff] %v209_v37  ;;  %v210_v45 = vpack.c.bf16 %v335_v41, %v333_v36  ;;  %348 = vpow2.f32 %v180_v39  ;;  %v58_v22 = vunpack.c.l.bf16 %v37_v29  ;;  %v59_v54 = vunpack.c.h.bf16 %v37_v29 }
  0x26   :  { %v339_v48 = vpop.eup %338  ;;  %350 = vpow2.f32 %v182_v43  ;;  %v184_v33 = vmul.f32 1.442695, %v148_v16  ;;  %v232_v59 = vpack.c.bf16 %v502_v19, %v500_v17  ;;  %v233_v61 = vpack.c.bf16 %v511_v26, %v507_v23 }
  0x27   :  { %v549_v51 = vpop.eup %340  ;;  %222 = vst [vmem:[#allocation5 + $0x10] sm:$0xff] %v210_v45  ;;  %v211_v53 = vpack.c.bf16 %v339_v48, %v337_v44  ;;  %352 = vtanh.f32 %v55_v40  ;;  %v60_v1 = vunpack.c.l.bf16 %v38_v50  ;;  %v234_v2 = vpack.c.bf16 %v519_v34, %v515_v30 }
  0x28   :  { %v551_v55 = vpop.eup %342  ;;  %v101_v57 = vadd.f32 1.0, %v549_v51  ;;  %354 = vpow2.f32 %v184_v33  ;;  %v61_v5 = vunpack.c.h.bf16 %v38_v50  ;;  %244 = vst [vmem:[#allocation6] sm:$0xff] %v232_v59  ;;  %v235_v17 = vpack.c.bf16 %v525_v42, %v522_v38 }
  0x29   :  { %v345_v62 = vpop.eup %344  ;;  %223 = vst [vmem:[#allocation5 + $0x18] sm:$0xff] %v211_v53  ;;  %v102_v63 = vadd.f32 1.0, %v551_v55  ;;  %356 = vtanh.f32 %v56_v46  ;;  %v62_v26 = vunpack.c.l.bf16 %v39_v58  ;;  %v63_v9 = vunpack.c.h.bf16 %v39_v58 }
  0x2a   :  { %v347_v3 = vpop.eup %346  ;;  %v125_v4 = vmul.f32 3.5, %v101_v57  ;;  %358 = vtanh.f32 %v57_v49  ;;  %245 = vst [vmem:[#allocation6 + $0x8] sm:$0xff] %v233_v61  ;;  %v236_v30 = vpack.c.bf16 %v531_v52, %v528_v47  ;;  %v237_v38 = vpack.c.bf16 %v535_v60, %v533_v56 }
  0x2b   :  { %v349_v19 = vpop.eup %348  ;;  %v212_v6 = vpack.c.bf16 %v347_v3, %v345_v62  ;;  %v126_v23 = vmul.f32 3.5, %v102_v63  ;;  %360 = vtanh.f32 %v58_v22  ;;  %246 = vst [vmem:[#allocation6 + $0x10] sm:$0xff] %v234_v2  ;;  %v238_v14 = vpack.c.bf16 %v549_v51, %v538_v0 }
  0x2c   :  { %v351_v7 = vpop.eup %350  ;;  %v149_v8 = vadd.f32 -5.0, %v125_v4  ;;  %362 = vtanh.f32 %v59_v54  ;;  %247 = vst [vmem:[#allocation6 + $0x18] sm:$0xff] %v235_v17 }
  0x2d   :  { %v353_v34 = vpop.eup %352  ;;  %224 = vst [vmem:[#allocation5 + $0x20] sm:$0xff] %v212_v6  ;;  %v213_v10 = vpack.c.bf16 %v351_v7, %v349_v19  ;;  %v150_v11 = vadd.f32 -5.0, %v126_v23  ;;  %364 = vtanh.f32 %v60_v1 }
  0x2e   :  { %v567_v42 = vpop.eup %354  ;;  %v186_v12 = vmul.f32 1.442695, %v149_v8  ;;  %v103_v13 = vadd.f32 1.0, %v353_v34  ;;  %366 = vtanh.f32 %v61_v5  ;;  %v239_v52 = vpack.c.bf16 %v353_v34, %v551_v55  ;;  %248 = vst [vmem:[#allocation6 + $0x20] sm:$0xff] %v236_v30 }
  0x2f   :  { %v357_v15 = vpop.eup %356  ;;  %225 = vst [vmem:[#allocation5 + $0x28] sm:$0xff] %v213_v10  ;;  %v188_v47 = vmul.f32 1.442695, %v150_v11  ;;  %368 = vtanh.f32 %v62_v26 }
  0x30   :  { %v359_v18 = vpop.eup %358  ;;  %370 = vpow2.f32 %v186_v12  ;;  %v127_v20 = vmul.f32 3.5, %v103_v13  ;;  %v104_v21 = vadd.f32 1.0, %v357_v15  ;;  %249 = vst [vmem:[#allocation6 + $0x28] sm:$0xff] %v237_v38 }
  0x31   :  { %v361_v56 = vpop.eup %360  ;;  %v105_v60 = vadd.f32 1.0, %v359_v18  ;;  %v240_v24 = vpack.c.bf16 %v359_v18, %v357_v15  ;;  %372 = vtanh.f32 %v63_v9  ;;  %250 = vst [vmem:[#allocation6 + $0x30] sm:$0xff] %v238_v14 }
  0x32   :  { %v363_v25 = vpop.eup %362  ;;  %v151_v27 = vadd.f32 -5.0, %v127_v20  ;;  %v128_v28 = vmul.f32 3.5, %v104_v21  ;;  %v106_v31 = vadd.f32 1.0, %v361_v56  ;;  %374 = vpow2.f32 %v188_v47  ;;  %251 = vst [vmem:[#allocation6 + $0x38] sm:$0xff] %v239_v52 }
  0x33   :  { %v365_v0 = vpop.eup %364  ;;  %v129_v32 = vmul.f32 3.5, %v105_v60  ;;  %v107_v35 = vadd.f32 1.0, %v363_v25  ;;  %v241_v36 = vpack.c.bf16 %v363_v25, %v361_v56  ;;  %252 = vst [vmem:[#allocation6 + $0x40] sm:$0xff] %v240_v24 }
  0x34   :  { %v367_v37 = vpop.eup %366  ;;  %v190_v39 = vmul.f32 1.442695, %v151_v27  ;;  %v152_v40 = vadd.f32 -5.0, %v128_v28  ;;  %v130_v41 = vmul.f32 3.5, %v106_v31  ;;  %v108_v43 = vadd.f32 1.0, %v365_v0 }
  0x35   :  { %v369_v16 = vpop.eup %368  ;;  %v153_v29 = vadd.f32 -5.0, %v129_v32  ;;  %v131_v44 = vmul.f32 3.5, %v107_v35  ;;  %v109_v45 = vadd.f32 1.0, %v367_v37  ;;  %253 = vst [vmem:[#allocation6 + $0x48] sm:$0xff] %v241_v36  ;;  %v242_v46 = vpack.c.bf16 %v367_v37, %v365_v0 }
  0x36   :  { %v371_v48 = vpop.eup %370  ;;  %376 = vpow2.f32 %v190_v39  ;;  %v192_v33 = vmul.f32 1.442695, %v152_v40  ;;  %v154_v49 = vadd.f32 -5.0, %v130_v41  ;;  %v132_v50 = vmul.f32 3.5, %v108_v43 }
  0x37   :  { %v214_v51 = vpack.c.bf16 %v371_v48, %v567_v42  ;;  %v194_v53 = vmul.f32 1.442695, %v153_v29  ;;  %v155_v22 = vadd.f32 -5.0, %v131_v44  ;;  %v133_v54 = vmul.f32 3.5, %v109_v45  ;;  %254 = vst [vmem:[#allocation6 + $0x50] sm:$0xff] %v242_v46  ;;  %v373_v55 = vpop.eup %372 }
  0x38   :  { %378 = vpow2.f32 %v192_v33  ;;  %v196_v57 = vmul.f32 1.442695, %v154_v49  ;;  %v156_v58 = vadd.f32 -5.0, %v132_v50  ;;  %v110_v59 = vadd.f32 1.0, %v369_v16  ;;  %v375_v61 = vpop.eup %374 }
  0x39   :  { %226 = vst [vmem:[#allocation5 + $0x30] sm:$0xff] %v214_v51  ;;  %380 = vpow2.f32 %v194_v53  ;;  %v198_v62 = vmul.f32 1.442695, %v155_v22  ;;  %v157_v63 = vadd.f32 -5.0, %v133_v54  ;;  %v111_v1 = vadd.f32 1.0, %v373_v55 }
  0x3a   :  { %382 = vpow2.f32 %v196_v57  ;;  %v200_v2 = vmul.f32 1.442695, %v156_v58  ;;  %v134_v3 = vmul.f32 3.5, %v110_v59  ;;  %v243_v4 = vpack.c.bf16 %v373_v55, %v369_v16 }
  0x3b   :  { %384 = vpow2.f32 %v198_v62  ;;  %v202_v5 = vmul.f32 1.442695, %v157_v63  ;;  %v135_v17 = vmul.f32 3.5, %v111_v1 }
  0x3c   :  { %v377_v19 = vpop.eup %376  ;;  %386 = vpow2.f32 %v200_v2  ;;  %v158_v6 = vadd.f32 -5.0, %v134_v3  ;;  %255 = vst [vmem:[#allocation6 + $0x58] sm:$0xff] %v243_v4 }
  0x3d   :  { %v215_v23 = vpack.c.bf16 %v377_v19, %v375_v61  ;;  %388 = vpow2.f32 %v202_v5  ;;  %v159_v26 = vadd.f32 -5.0, %v135_v17  ;;  %281 = dma.vmem_to_hbm [thread:$0]  %s274_s16, 1536, %s276_s19, [#allocation7], %s473_s14, %s473_s14, %s474_s15  }
  0x3e   :  { %v379_v7 = vpop.eup %378  ;;  %v204_v8 = vmul.f32 1.442695, %v158_v6 }
  0x3f   :  { %v381_v9 = vpop.eup %380  ;;  %227 = vst [vmem:[#allocation5 + $0x38] sm:$0xff] %v215_v23  ;;  %v206_v30 = vmul.f32 1.442695, %v159_v26 }
  0x40   :  { %v383_v34 = vpop.eup %382  ;;  %v216_v10 = vpack.c.bf16 %v381_v9, %v379_v7  ;;  %390 = vpow2.f32 %v204_v8 }
  0x41   :  { %v385_v11 = vpop.eup %384  ;;  %392 = vpow2.f32 %v206_v30 }
  0x42   :  { %v387_v38 = vpop.eup %386  ;;  %228 = vst [vmem:[#allocation5 + $0x40] sm:$0xff] %v216_v10  ;;  %v217_v42 = vpack.c.bf16 %v385_v11, %v383_v34 }
  0x43   :  { %v389_v12 = vpop.eup %388 }
  0x44   :  { %229 = vst [vmem:[#allocation5 + $0x48] sm:$0xff] %v217_v42  ;;  %v218_v13 = vpack.c.bf16 %v389_v12, %v387_v38 }
  0x46   :  { %v391_v14 = vpop.eup %390  ;;  %230 = vst [vmem:[#allocation5 + $0x50] sm:$0xff] %v218_v13 }
  0x47   :  { %v393_v15 = vpop.eup %392 }
  0x48   :  { %v219_v47 = vpack.c.bf16 %v393_v15, %v391_v14 }
  0x4a   :  { %231 = vst [vmem:[#allocation5 + $0x58] sm:$0xff] %v219_v47 }
  0x4b   :  { %268 = dma.vmem_to_hbm [thread:$0]  %s261_s20, 1536, %s263_s23, [#allocation4], %s473_s14, %s473_s14, %s474_s15  }
  0x4c   :  { %468 = dma.done.wait [#allocation4], 1536  }
  0x4d   :  { %469 = vsyncadd [#allocation4], 4294965760 }
  0x4e   :  { %470 = dma.done.wait [#allocation7], 1536  }
  0x4f   :  { %471 = vsyncadd [#allocation7], 4294965760 }
  0x50   :  { %290 = vsyncpa [#allocation3], 1 }
  0x51   :  { %291 = vsyncpa [#allocation4], 1 }
  0x52   :  { %292 = vsyncpa [#allocation7], 1 }

</bundles_post_ra>
